<compile_context>
chip_gen: v5e
topology: v5e:2x2
jax: 0.10.0
libtpu: 0.0.40
codegen_flags: <defaults>
</compile_context>

<pallas_src>
import functools

import jax
import jax.numpy as jnp
import numpy as np
from jax import lax
from jax.experimental import pallas as pl
from jax.experimental.pallas import tpu as pltpu

PAD_IDX = 0
VOCAB = ['<pad>', '<unk>', 'a', 'b', 'c', 'd', 'e', 'f', 'g']
VOCAB_SIZE = len(VOCAB)

_LANE = 128       # lane width
_SUBLANE = 8      # sublane count
_B_TILE = 8       # batch rows per grid step (one sublane group)
_MAX_UNROLL = 8   # cap on the time-loop unroll factor


def _round_up(x, m):
    return (x + m - 1) // m * m


def _pad2d(x, rows, cols):
    return jnp.pad(x, ((0, rows - x.shape[0]), (0, cols - x.shape[1])))


def _rnn_kernel(p_all_ref, w_hh_ref, w_fc_ref, b_fc_ref, out_ref):
    """One batch tile of the whole forward pass.

    p_all_ref : VMEM (T, B_TILE, Hp)  time-major fused input projection
                emb[tok] @ W_ih + (b_ih + b_hh), precomputed in the wrapper.
    w_hh_ref  : VMEM (Hp, Hp)   f32 or bf16
    w_fc_ref  : VMEM (Hp, Op)   f32 or bf16
    b_fc_ref  : VMEM (1, Op)    f32
    out_ref   : VMEM (B_TILE, Op) f32 logits (padded)
    """
    t_len, b_tile, h_pad = p_all_ref.shape
    w_dtype = w_hh_ref.dtype

    def step(t, h):
        # Single aligned (B_TILE, Hp) vector load; no scratch write, the
        # projection stays in vregs on the recurrent critical path.
        p = p_all_ref[t].astype(jnp.float32)
        hw = jnp.dot(h.astype(w_dtype), w_hh_ref[...],
                     preferred_element_type=jnp.float32)
        return jnp.tanh(p + hw)

    h0 = jnp.zeros((b_tile, h_pad), dtype=jnp.float32)
    h = lax.fori_loop(0, t_len, step, h0, unroll=min(t_len, _MAX_UNROLL))

    # Fused fc head on the final hidden state; one unmasked full-vreg store.
    out_ref[...] = (
        jnp.dot(h.astype(w_dtype), w_fc_ref[...],
                preferred_element_type=jnp.float32)
        + b_fc_ref[...]).astype(out_ref.dtype)


def prepare_kernel_params(params, use_bf16=False):
    """Fuse + pad torch-layout params into lane-dense kernel operands.

    use_bf16=True casts the matmul operands (ptab / W_hh / W_fc) to bf16 for
    native MXU inputs on v6e/v7x; this trades the 1e-5 match vs. the f32
    reference, so it is off by default.
    """
    emb = params["embedding"]          # (V, E)
    w_ih = params["w_ih"]              # (E, H)  == torch weight_ih_l0.T
    w_hh = params["w_hh"]              # (H, H)  == torch weight_hh_l0.T
    b = params["b"]                    # (1, H)  == (b_ih + b_hh)[None]
    w_fc = params["w_fc"]              # (H, O)  == torch fc.weight.T
    b_fc = params["b_fc"]              # (1, O)

    H = w_hh.shape[0]
    O = w_fc.shape[1]
    Hp = _round_up(H, _LANE)
    Op = _round_up(O, _LANE)

    # Hoisted input projection: gather and x @ W_ih commute, so project the
    # (tiny) vocab table once and fold the RNN biases in as well.
    ptab = emb @ w_ih + b              # (V, H)

    mm_dtype = jnp.bfloat16 if use_bf16 else jnp.float32
    return {
        "ptab": jnp.pad(ptab, ((0, 0), (0, Hp - H))).astype(mm_dtype),
        "w_hh": _pad2d(w_hh, Hp, Hp).astype(mm_dtype),
        "w_fc": _pad2d(w_fc, Hp, Op).astype(mm_dtype),
        "b_fc": _pad2d(b_fc, 1, Op).astype(jnp.float32),
    }


@functools.partial(jax.jit, static_argnums=(2,))
def model_rnn_forward(token_ids, kparams, output_dim):
    """token_ids: (B, T) int32. Returns logits (B, output_dim)."""
    B, T = token_ids.shape
    Bp = _round_up(B, _B_TILE)
    Hp = kparams["w_hh"].shape[0]
    Op = kparams["w_fc"].shape[1]
    n_btiles = Bp // _B_TILE

    # Pad batch with <pad> rows (rows are independent; padded rows are sliced
    # off below) and build the time-major projected-input slab in the wrapper:
    # gather + input matmul are hoisted entirely out of the recurrence.
    ids = jnp.pad(token_ids.astype(jnp.int32), ((0, Bp - B), (0, 0)))
    p_all = jnp.take(kparams["ptab"], ids.T, axis=0)      # (T, Bp, Hp)

    w_bytes = (kparams["w_hh"].size * kparams["w_hh"].dtype.itemsize
               + kparams["w_fc"].size * kparams["w_fc"].dtype.itemsize
               + kparams["b_fc"].size * 4)
    cost = pl.CostEstimate(
        flops=2 * T * Bp * Hp * Hp + 2 * Bp * Hp * Op,
        transcendentals=T * Bp * Hp,
        bytes_accessed=(p_all.size * p_all.dtype.itemsize
                        + w_bytes + Bp * Op * 4),
    )

    out_padded = pl.pallas_call(
        _rnn_kernel,
        out_shape=jax.ShapeDtypeStruct((Bp, Op), jnp.float32),
        grid=(n_btiles,),
        in_specs=[
            pl.BlockSpec((T, _B_TILE, Hp), lambda i: (0, i, 0)),   # p_all
            pl.BlockSpec((Hp, Hp), lambda i: (0, 0)),              # w_hh
            pl.BlockSpec((Hp, Op), lambda i: (0, 0)),              # w_fc
            pl.BlockSpec((1, Op), lambda i: (0, 0)),               # b_fc
        ],
        out_specs=pl.BlockSpec((_B_TILE, Op), lambda i: (i, 0)),
        compiler_params=pltpu.CompilerParams(
            dimension_semantics=("parallel",)),
        cost_estimate=cost,
    )(p_all, kparams["w_hh"], kparams["w_fc"], kparams["b_fc"])

    return out_padded[:B, :output_dim]


def init_params(key, vocab_size, embed_dim, hidden_dim, output_dim):
    ks = jax.random.split(key, 6)
    emb = jax.random.normal(ks[0], (vocab_size, embed_dim), jnp.float32)
    emb = emb.at[PAD_IDX].set(0.0)  # padding_idx row is zero in nn.Embedding

    # PyTorch RNN/Linear default init: U(-1/sqrt(hidden_dim), 1/sqrt(hidden_dim))
    bound = 1.0 / np.sqrt(hidden_dim)
    w_ih = jax.random.uniform(ks[1], (embed_dim, hidden_dim), jnp.float32,
                              -bound, bound)
    w_hh = jax.random.uniform(ks[2], (hidden_dim, hidden_dim), jnp.float32,
                              -bound, bound)
    b_ih = jax.random.uniform(ks[3], (hidden_dim,), jnp.float32, -bound, bound)
    b_hh = jax.random.uniform(ks[4], (hidden_dim,), jnp.float32, -bound, bound)
    w_fc = jax.random.uniform(ks[5], (hidden_dim, output_dim), jnp.float32,
                              -bound, bound)
    b_fc = jnp.zeros((output_dim,), jnp.float32)

    return {
        "embedding": emb,
        "w_ih": w_ih,
        "w_hh": w_hh,
        "b": (b_ih + b_hh)[None, :],
        "w_fc": w_fc,
        "b_fc": b_fc[None, :],
    }


def reference_forward(token_ids, params):
    """Pure-JAX reference matching the torch module semantics."""
    emb = jnp.take(params["embedding"], token_ids, axis=0)  # (B, T, E)
    B, T, E = emb.shape
    H = params["w_hh"].shape[0]
    h = jnp.zeros((B, H), jnp.float32)
    for t in range(T):
        h = jnp.tanh(emb[:, t, :] @ params["w_ih"]
                     + h @ params["w_hh"] + params["b"])
    return h @ params["w_fc"] + params["b_fc"]


if __name__ == "__main__":
    embed_dim, hidden_dim, output_dim = 16, 32, 4
    B, T = 4, 8

    key = jax.random.PRNGKey(0)
    k_tok, k_par = jax.random.split(key)
    token_ids = jax.random.randint(k_tok, (B, T), 0, VOCAB_SIZE, jnp.int32)
    params = init_params(k_par, VOCAB_SIZE, embed_dim, hidden_dim, output_dim)
    kparams = prepare_kernel_params(params, use_bf16=False)

    out = model_rnn_forward(token_ids, kparams, output_dim)
    out = jax.block_until_ready(out)

    ref = reference_forward(token_ids, params)
    np.testing.assert_allclose(np.asarray(out), np.asarray(ref),
                               rtol=1e-5, atol=1e-5)
    print("KERNEL_OK")
</pallas_src>

<mosaic_0001>
module attributes {stable_mosaic.version = 11 : i64} {
  func.func @_rnn_kernel(%arg0: i32, %arg1: memref<8x8x128xf32, #tpu.memory_space<vmem>>, %arg2: memref<128x128xf32, #tpu.memory_space<vmem>>, %arg3: memref<128x128xf32, #tpu.memory_space<vmem>>, %arg4: memref<1x128xf32, #tpu.memory_space<vmem>>, %arg5: memref<8x128xf32, #tpu.memory_space<vmem>>) attributes {dimension_semantics = [#tpu.dimension_semantics<parallel>], iteration_bounds = array<i64: 1>, scalar_prefetch = 0 : i64, scratch_operands = 0 : i64, tpu.core_type = #tpu.core_type<tc>, window_params = [{transform_indices = @transform_0, window_bounds = array<i64: 8, 8, 128>}, {pipeline_mode = #tpu.pipeline_mode<synchronous>, transform_indices = @transform_1, window_bounds = array<i64: 128, 128>}, {pipeline_mode = #tpu.pipeline_mode<synchronous>, transform_indices = @transform_2, window_bounds = array<i64: 128, 128>}, {pipeline_mode = #tpu.pipeline_mode<synchronous>, transform_indices = @transform_3, window_bounds = array<i64: 1, 128>}, {transform_indices = @transform_4, window_bounds = array<i64: 8, 128>}]} {
    %cst = arith.constant 0.000000e+00 : f32
    %0 = vector.broadcast %cst : f32 to vector<8x128xf32>
    %c0_i32 = arith.constant 0 : i32
    %1 = arith.index_cast %c0_i32 : i32 to index
    %c0 = arith.constant 0 : index
    %c0_0 = arith.constant 0 : index
    %2 = vector.load %arg1[%1, %c0, %c0_0] : memref<8x8x128xf32, #tpu.memory_space<vmem>>, vector<1x8x128xf32>
    %3 = vector.shape_cast %2 : vector<1x8x128xf32> to vector<8x128xf32>
    %c0_1 = arith.constant 0 : index
    %c0_2 = arith.constant 0 : index
    %4 = vector.load %arg2[%c0_1, %c0_2] : memref<128x128xf32, #tpu.memory_space<vmem>>, vector<128x128xf32>
    %cst_3 = arith.constant dense<0.000000e+00> : vector<8x128xf32>
    %5 = tpu.matmul %0, %4, %cst_3 {dimension_numbers = #tpu.dot_dimension_numbers<[1], [0], [0], [1], [0, 0, 1, 1], [], []>} : vector<8x128xf32>, vector<128x128xf32>, vector<8x128xf32> -> vector<8x128xf32>
    %6 = arith.addf %3, %5 : vector<8x128xf32>
    %7 = math.tanh %6 : vector<8x128xf32>
    %c1_i32 = arith.constant 1 : i32
    %8 = arith.index_cast %c1_i32 : i32 to index
    %c0_4 = arith.constant 0 : index
    %c0_5 = arith.constant 0 : index
    %9 = vector.load %arg1[%8, %c0_4, %c0_5] : memref<8x8x128xf32, #tpu.memory_space<vmem>>, vector<1x8x128xf32>
    %10 = vector.shape_cast %9 : vector<1x8x128xf32> to vector<8x128xf32>
    %c0_6 = arith.constant 0 : index
    %c0_7 = arith.constant 0 : index
    %11 = vector.load %arg2[%c0_6, %c0_7] : memref<128x128xf32, #tpu.memory_space<vmem>>, vector<128x128xf32>
    %cst_8 = arith.constant dense<0.000000e+00> : vector<8x128xf32>
    %12 = tpu.matmul %7, %11, %cst_8 {dimension_numbers = #tpu.dot_dimension_numbers<[1], [0], [0], [1], [0, 0, 1, 1], [], []>} : vector<8x128xf32>, vector<128x128xf32>, vector<8x128xf32> -> vector<8x128xf32>
    %13 = arith.addf %10, %12 : vector<8x128xf32>
    %14 = math.tanh %13 : vector<8x128xf32>
    %c2_i32 = arith.constant 2 : i32
    %15 = arith.index_cast %c2_i32 : i32 to index
    %c0_9 = arith.constant 0 : index
    %c0_10 = arith.constant 0 : index
    %16 = vector.load %arg1[%15, %c0_9, %c0_10] : memref<8x8x128xf32, #tpu.memory_space<vmem>>, vector<1x8x128xf32>
    %17 = vector.shape_cast %16 : vector<1x8x128xf32> to vector<8x128xf32>
    %c0_11 = arith.constant 0 : index
    %c0_12 = arith.constant 0 : index
    %18 = vector.load %arg2[%c0_11, %c0_12] : memref<128x128xf32, #tpu.memory_space<vmem>>, vector<128x128xf32>
    %cst_13 = arith.constant dense<0.000000e+00> : vector<8x128xf32>
    %19 = tpu.matmul %14, %18, %cst_13 {dimension_numbers = #tpu.dot_dimension_numbers<[1], [0], [0], [1], [0, 0, 1, 1], [], []>} : vector<8x128xf32>, vector<128x128xf32>, vector<8x128xf32> -> vector<8x128xf32>
    %20 = arith.addf %17, %19 : vector<8x128xf32>
    %21 = math.tanh %20 : vector<8x128xf32>
    %c3_i32 = arith.constant 3 : i32
    %22 = arith.index_cast %c3_i32 : i32 to index
    %c0_14 = arith.constant 0 : index
    %c0_15 = arith.constant 0 : index
    %23 = vector.load %arg1[%22, %c0_14, %c0_15] : memref<8x8x128xf32, #tpu.memory_space<vmem>>, vector<1x8x128xf32>
    %24 = vector.shape_cast %23 : vector<1x8x128xf32> to vector<8x128xf32>
    %c0_16 = arith.constant 0 : index
    %c0_17 = arith.constant 0 : index
    %25 = vector.load %arg2[%c0_16, %c0_17] : memref<128x128xf32, #tpu.memory_space<vmem>>, vector<128x128xf32>
    %cst_18 = arith.constant dense<0.000000e+00> : vector<8x128xf32>
    %26 = tpu.matmul %21, %25, %cst_18 {dimension_numbers = #tpu.dot_dimension_numbers<[1], [0], [0], [1], [0, 0, 1, 1], [], []>} : vector<8x128xf32>, vector<128x128xf32>, vector<8x128xf32> -> vector<8x128xf32>
    %27 = arith.addf %24, %26 : vector<8x128xf32>
    %28 = math.tanh %27 : vector<8x128xf32>
    %c4_i32 = arith.constant 4 : i32
    %29 = arith.index_cast %c4_i32 : i32 to index
    %c0_19 = arith.constant 0 : index
    %c0_20 = arith.constant 0 : index
    %30 = vector.load %arg1[%29, %c0_19, %c0_20] : memref<8x8x128xf32, #tpu.memory_space<vmem>>, vector<1x8x128xf32>
    %31 = vector.shape_cast %30 : vector<1x8x128xf32> to vector<8x128xf32>
    %c0_21 = arith.constant 0 : index
    %c0_22 = arith.constant 0 : index
    %32 = vector.load %arg2[%c0_21, %c0_22] : memref<128x128xf32, #tpu.memory_space<vmem>>, vector<128x128xf32>
    %cst_23 = arith.constant dense<0.000000e+00> : vector<8x128xf32>
    %33 = tpu.matmul %28, %32, %cst_23 {dimension_numbers = #tpu.dot_dimension_numbers<[1], [0], [0], [1], [0, 0, 1, 1], [], []>} : vector<8x128xf32>, vector<128x128xf32>, vector<8x128xf32> -> vector<8x128xf32>
    %34 = arith.addf %31, %33 : vector<8x128xf32>
    %35 = math.tanh %34 : vector<8x128xf32>
    %c5_i32 = arith.constant 5 : i32
    %36 = arith.index_cast %c5_i32 : i32 to index
    %c0_24 = arith.constant 0 : index
    %c0_25 = arith.constant 0 : index
    %37 = vector.load %arg1[%36, %c0_24, %c0_25] : memref<8x8x128xf32, #tpu.memory_space<vmem>>, vector<1x8x128xf32>
    %38 = vector.shape_cast %37 : vector<1x8x128xf32> to vector<8x128xf32>
    %c0_26 = arith.constant 0 : index
    %c0_27 = arith.constant 0 : index
    %39 = vector.load %arg2[%c0_26, %c0_27] : memref<128x128xf32, #tpu.memory_space<vmem>>, vector<128x128xf32>
    %cst_28 = arith.constant dense<0.000000e+00> : vector<8x128xf32>
    %40 = tpu.matmul %35, %39, %cst_28 {dimension_numbers = #tpu.dot_dimension_numbers<[1], [0], [0], [1], [0, 0, 1, 1], [], []>} : vector<8x128xf32>, vector<128x128xf32>, vector<8x128xf32> -> vector<8x128xf32>
    %41 = arith.addf %38, %40 : vector<8x128xf32>
    %42 = math.tanh %41 : vector<8x128xf32>
    %c6_i32 = arith.constant 6 : i32
    %43 = arith.index_cast %c6_i32 : i32 to index
    %c0_29 = arith.constant 0 : index
    %c0_30 = arith.constant 0 : index
    %44 = vector.load %arg1[%43, %c0_29, %c0_30] : memref<8x8x128xf32, #tpu.memory_space<vmem>>, vector<1x8x128xf32>
    %45 = vector.shape_cast %44 : vector<1x8x128xf32> to vector<8x128xf32>
    %c0_31 = arith.constant 0 : index
    %c0_32 = arith.constant 0 : index
    %46 = vector.load %arg2[%c0_31, %c0_32] : memref<128x128xf32, #tpu.memory_space<vmem>>, vector<128x128xf32>
    %cst_33 = arith.constant dense<0.000000e+00> : vector<8x128xf32>
    %47 = tpu.matmul %42, %46, %cst_33 {dimension_numbers = #tpu.dot_dimension_numbers<[1], [0], [0], [1], [0, 0, 1, 1], [], []>} : vector<8x128xf32>, vector<128x128xf32>, vector<8x128xf32> -> vector<8x128xf32>
    %48 = arith.addf %45, %47 : vector<8x128xf32>
    %49 = math.tanh %48 : vector<8x128xf32>
    %c7_i32 = arith.constant 7 : i32
    %50 = arith.index_cast %c7_i32 : i32 to index
    %c0_34 = arith.constant 0 : index
    %c0_35 = arith.constant 0 : index
    %51 = vector.load %arg1[%50, %c0_34, %c0_35] : memref<8x8x128xf32, #tpu.memory_space<vmem>>, vector<1x8x128xf32>
    %52 = vector.shape_cast %51 : vector<1x8x128xf32> to vector<8x128xf32>
    %c0_36 = arith.constant 0 : index
    %c0_37 = arith.constant 0 : index
    %53 = vector.load %arg2[%c0_36, %c0_37] : memref<128x128xf32, #tpu.memory_space<vmem>>, vector<128x128xf32>
    %cst_38 = arith.constant dense<0.000000e+00> : vector<8x128xf32>
    %54 = tpu.matmul %49, %53, %cst_38 {dimension_numbers = #tpu.dot_dimension_numbers<[1], [0], [0], [1], [0, 0, 1, 1], [], []>} : vector<8x128xf32>, vector<128x128xf32>, vector<8x128xf32> -> vector<8x128xf32>
    %55 = arith.addf %52, %54 : vector<8x128xf32>
    %56 = math.tanh %55 : vector<8x128xf32>
    %c8_i32 = arith.constant 8 : i32
    %c0_39 = arith.constant 0 : index
    %c0_40 = arith.constant 0 : index
    %57 = vector.load %arg3[%c0_39, %c0_40] : memref<128x128xf32, #tpu.memory_space<vmem>>, vector<128x128xf32>
    %cst_41 = arith.constant dense<0.000000e+00> : vector<8x128xf32>
    %58 = tpu.matmul %56, %57, %cst_41 {dimension_numbers = #tpu.dot_dimension_numbers<[1], [0], [0], [1], [0, 0, 1, 1], [], []>} : vector<8x128xf32>, vector<128x128xf32>, vector<8x128xf32> -> vector<8x128xf32>
    %c0_42 = arith.constant 0 : index
    %c0_43 = arith.constant 0 : index
    %59 = vector.load %arg4[%c0_42, %c0_43] : memref<1x128xf32, #tpu.memory_space<vmem>>, vector<1x128xf32>
    %60 = vector.broadcast %59 : vector<1x128xf32> to vector<8x128xf32>
    %61 = arith.addf %58, %60 : vector<8x128xf32>
    %c0_44 = arith.constant 0 : index
    %c0_45 = arith.constant 0 : index
    %62 = vector.load %arg5[%c0_44, %c0_45] : memref<8x128xf32, #tpu.memory_space<vmem>>, vector<8x128xf32>
    tpu.vector_store %arg5[%c0_44, %c0_45], %61 {strides = array<i32>} : memref<8x128xf32, #tpu.memory_space<vmem>>, vector<8x128xf32>,
    return
  }
  func.func @transform_0(%arg0: i32) -> (i32, i32, i32) {
    %c0_i32 = arith.constant 0 : i32
    %c0_i32_0 = arith.constant 0 : i32
    %c0_i32_1 = arith.constant 0 : i32
    return %c0_i32, %arg0, %c0_i32_0 : i32, i32, i32
  }
  func.func @transform_1(%arg0: i32) -> (i32, i32) {
    %c0_i32 = arith.constant 0 : i32
    %c0_i32_0 = arith.constant 0 : i32
    %c0_i32_1 = arith.constant 0 : i32
    return %c0_i32, %c0_i32_0 : i32, i32
  }
  func.func @transform_2(%arg0: i32) -> (i32, i32) {
    %c0_i32 = arith.constant 0 : i32
    %c0_i32_0 = arith.constant 0 : i32
    %c0_i32_1 = arith.constant 0 : i32
    return %c0_i32, %c0_i32_0 : i32, i32
  }
  func.func @transform_3(%arg0: i32) -> (i32, i32) {
    %c0_i32 = arith.constant 0 : i32
    %c0_i32_0 = arith.constant 0 : i32
    %c0_i32_1 = arith.constant 0 : i32
    return %c0_i32, %c0_i32_0 : i32, i32
  }
  func.func @transform_4(%arg0: i32) -> (i32, i32) {
    %c0_i32 = arith.constant 0 : i32
    %c0_i32_0 = arith.constant 0 : i32
    return %arg0, %c0_i32 : i32, i32
  }
}

</mosaic_0001>

<bundles_post_ra>
// kernel: model_rnn_forward.1
= control target key start
LH: loop header
LB: loop body
LE: loop exit
PB: predicated region body
PF: predicated region fallthrough
CT: control target
= control target key end

     0   :  { %v294_v16 = vmov 0.0   ;;  %s606_s1 = inlined_call_operand.vmem [shape: f32[128,128], index: 1, kind: input, shape index: {}]   ;;  %s607_s0 = inlined_call_operand.vmem [shape: f32[8,8,128], index: 0, kind: input, shape index: {}]   ;;  %s608_s2 = inlined_call_operand.vmem [shape: f32[128,128], index: 2, kind: input, shape index: {}]   ;;  %s609_s3 = inlined_call_operand.vmem [shape: f32[1,128], index: 3, kind: input, shape index: {}]   ;;  %s610_s4 = inlined_call_operand.vmem [shape: f32[8,128], index: 4, kind: output, shape index: {}]  }
   0x1   :  { %v323_v0 = vld [vmem:[%s606_s1 + $0x78] sm:$0xff]  ;;  %v328_v1 = vld [vmem:[%s606_s1 + $0x70] sm:$0xff]  ;;  %v335_v2 = vld [vmem:[%s606_s1 + $0x68] sm:$0xff] }
   0x2   :  { %34 = vmatpush.msra.mxu0 %v323_v0  ;;  %58 = vmatpush.msra.mxu1 %v323_v0  ;;  %v344_v3 = vld [vmem:[%s606_s1 + $0x60] sm:$0xff]  ;;  %v353_v4 = vld [vmem:[%s606_s1 + $0x58] sm:$0xff]  ;;  %v362_v5 = vld [vmem:[%s606_s1 + $0x50] sm:$0xff] }
   0x3   :  { %82 = vmatpush.msra.mxu2 %v323_v0  ;;  %106 = vmatpush.msra.mxu3 %v323_v0  ;;  %v371_v6 = vld [vmem:[%s606_s1 + $0x48] sm:$0xff]  ;;  %v380_v7 = vld [vmem:[%s606_s1 + $0x40] sm:$0xff]  ;;  %v389_v8 = vld [vmem:[%s606_s1 + $0x38] sm:$0xff] }
   0x4   :  { %35 = vmatpush.msra.mxu0 %v328_v1  ;;  %59 = vmatpush.msra.mxu1 %v328_v1  ;;  %v398_v9 = vld [vmem:[%s606_s1 + $0x30] sm:$0xff]  ;;  %v407_v10 = vld [vmem:[%s606_s1 + $0x28] sm:$0xff]  ;;  %v416_v11 = vld [vmem:[%s606_s1 + $0x20] sm:$0xff] }
   0x5   :  { %83 = vmatpush.msra.mxu2 %v328_v1  ;;  %107 = vmatpush.msra.mxu3 %v328_v1  ;;  %v425_v12 = vld [vmem:[%s606_s1 + $0x18] sm:$0xff]  ;;  %v434_v13 = vld [vmem:[%s606_s1 + $0x10] sm:$0xff]  ;;  %v443_v14 = vld [vmem:[%s606_s1 + $0x8] sm:$0xff] }
   0x6   :  { %36 = vmatpush.msra.mxu0 %v335_v2  ;;  %60 = vmatpush.msra.mxu1 %v335_v2  ;;  %v452_v15 = vld [vmem:[%s606_s1] sm:$0xff]  ;;  %v269_v21 = vld [vmem:[%s607_s0 + $0x8] sm:$0xff]  ;;  %v270_v25 = vld [vmem:[%s607_s0 + $0x10] sm:$0xff] }
   0x7   :  { %84 = vmatpush.msra.mxu2 %v335_v2  ;;  %108 = vmatpush.msra.mxu3 %v335_v2  ;;  %v17_v17 = vld [vmem:[%s607_s0] sm:$0xff]  ;;  %v271_v29 = vld [vmem:[%s607_s0 + $0x18] sm:$0xff]  ;;  %v273_v37 = vld [vmem:[%s607_s0 + $0x28] sm:$0xff] }
   0x8   :  { %37 = vmatpush.msra.mxu0 %v344_v3  ;;  %61 = vmatpush.msra.mxu1 %v344_v3  ;;  %v272_v33 = vld [vmem:[%s607_s0 + $0x20] sm:$0xff]  ;;  %v239_v41 = vld [vmem:[%s608_s2 + $0x78] sm:$0xff]  ;;  %v238_v42 = vld [vmem:[%s608_s2 + $0x70] sm:$0xff] }
   0x9   :  { %85 = vmatpush.msra.mxu2 %v344_v3  ;;  %109 = vmatpush.msra.mxu3 %v344_v3  ;;  %v237_v43 = vld [vmem:[%s608_s2 + $0x68] sm:$0xff]  ;;  %v236_v44 = vld [vmem:[%s608_s2 + $0x60] sm:$0xff]  ;;  %v235_v45 = vld [vmem:[%s608_s2 + $0x58] sm:$0xff] }
   0xa   :  { %38 = vmatpush.msra.mxu0 %v353_v4  ;;  %62 = vmatpush.msra.mxu1 %v353_v4  ;;  %v234_v46 = vld [vmem:[%s608_s2 + $0x50] sm:$0xff]  ;;  %v233_v47 = vld [vmem:[%s608_s2 + $0x48] sm:$0xff]  ;;  %v232_v48 = vld [vmem:[%s608_s2 + $0x40] sm:$0xff] }
   0xb   :  { %86 = vmatpush.msra.mxu2 %v353_v4  ;;  %110 = vmatpush.msra.mxu3 %v353_v4  ;;  %v231_v49 = vld [vmem:[%s608_s2 + $0x38] sm:$0xff]  ;;  %v230_v50 = vld [vmem:[%s608_s2 + $0x30] sm:$0xff]  ;;  %v229_v51 = vld [vmem:[%s608_s2 + $0x28] sm:$0xff] }
   0xc   :  { %39 = vmatpush.msra.mxu0 %v362_v5  ;;  %63 = vmatpush.msra.mxu1 %v362_v5  ;;  %v274_v52 = vld [vmem:[%s607_s0 + $0x30] sm:$0xff]  ;;  %v228_v56 = vld [vmem:[%s608_s2 + $0x20] sm:$0xff]  ;;  %v227_v57 = vld [vmem:[%s608_s2 + $0x18] sm:$0xff] }
   0xd   :  { %87 = vmatpush.msra.mxu2 %v362_v5  ;;  %111 = vmatpush.msra.mxu3 %v362_v5  ;;  %v226_v58 = vld [vmem:[%s608_s2 + $0x10] sm:$0xff]  ;;  %v225_v59 = vld [vmem:[%s608_s2 + $0x8] sm:$0xff]  ;;  %v224_v60 = vld [vmem:[%s608_s2] sm:$0xff] }
   0xe   :  { %40 = vmatpush.msra.mxu0 %v371_v6  ;;  %64 = vmatpush.msra.mxu1 %v371_v6  ;;  %v275_v61 = vld [vmem:[%s607_s0 + $0x38] sm:$0xff] }
   0xf   :  { %88 = vmatpush.msra.mxu2 %v371_v6  ;;  %112 = vmatpush.msra.mxu3 %v371_v6 }
  0x10   :  { %41 = vmatpush.msra.mxu0 %v380_v7  ;;  %65 = vmatpush.msra.mxu1 %v380_v7 }
  0x11   :  { %89 = vmatpush.msra.mxu2 %v380_v7  ;;  %113 = vmatpush.msra.mxu3 %v380_v7 }
  0x12   :  { %42 = vmatpush.msra.mxu0 %v389_v8  ;;  %66 = vmatpush.msra.mxu1 %v389_v8 }
  0x13   :  { %90 = vmatpush.msra.mxu2 %v389_v8  ;;  %114 = vmatpush.msra.mxu3 %v389_v8 }
  0x14   :  { %43 = vmatpush.msra.mxu0 %v398_v9  ;;  %67 = vmatpush.msra.mxu1 %v398_v9 }
  0x15   :  { %91 = vmatpush.msra.mxu2 %v398_v9  ;;  %115 = vmatpush.msra.mxu3 %v398_v9 }
  0x16   :  { %44 = vmatpush.msra.mxu0 %v407_v10  ;;  %68 = vmatpush.msra.mxu1 %v407_v10 }
  0x17   :  { %92 = vmatpush.msra.mxu2 %v407_v10  ;;  %116 = vmatpush.msra.mxu3 %v407_v10 }
  0x18   :  { %45 = vmatpush.msra.mxu0 %v416_v11  ;;  %69 = vmatpush.msra.mxu1 %v416_v11 }
  0x19   :  { %93 = vmatpush.msra.mxu2 %v416_v11  ;;  %117 = vmatpush.msra.mxu3 %v416_v11 }
  0x1a   :  { %46 = vmatpush.msra.mxu0 %v425_v12  ;;  %70 = vmatpush.msra.mxu1 %v425_v12 }
  0x1b   :  { %94 = vmatpush.msra.mxu2 %v425_v12  ;;  %118 = vmatpush.msra.mxu3 %v425_v12 }
  0x1c   :  { %47 = vmatpush.msra.mxu0 %v434_v13  ;;  %71 = vmatpush.msra.mxu1 %v434_v13 }
  0x1d   :  { %95 = vmatpush.msra.mxu2 %v434_v13  ;;  %119 = vmatpush.msra.mxu3 %v434_v13 }
  0x1e   :  { %48 = vmatpush.msra.mxu0 %v443_v14  ;;  %72 = vmatpush.msra.mxu1 %v443_v14 }
  0x1f   :  { %96 = vmatpush.msra.mxu2 %v443_v14  ;;  %120 = vmatpush.msra.mxu3 %v443_v14 }
  0x20   :  { %49 = vmatpush.msra.mxu0 %v452_v15  ;;  %73 = vmatpush.msra.mxu1 %v452_v15 }
  0x21   :  { %50 = vmatmul.f32.vlgmr.msra.gmra.mxu0 %v294_v16  ;;  %97 = vmatpush.msra.mxu2 %v452_v15 }
  0x22   :  { %121 = vmatpush.msra.mxu3 %v452_v15  ;;  %130 = vmatpush.msrb.mxu0 %v323_v0 }
  0x23   :  { %154 = vmatpush.msrb.mxu1 %v323_v0  ;;  %178 = vmatpush.msrb.mxu2 %v323_v0 }
  0x24   :  { %131 = vmatpush.msrb.mxu0 %v328_v1  ;;  %202 = vmatpush.msrb.mxu3 %v323_v0 }
  0x25   :  { %155 = vmatpush.msrb.mxu1 %v328_v1  ;;  %179 = vmatpush.msrb.mxu2 %v328_v1 }
  0x26   :  { %132 = vmatpush.msrb.mxu0 %v335_v2  ;;  %203 = vmatpush.msrb.mxu3 %v328_v1  ;;  %v277_v1 = vld [vmem:[%s609_s3] ss:$0 sm:$0xff] }
  0x27   :  { %156 = vmatpush.msrb.mxu1 %v335_v2  ;;  %180 = vmatpush.msrb.mxu2 %v335_v2 }
  0x28   :  { %133 = vmatpush.msrb.mxu0 %v344_v3  ;;  %204 = vmatpush.msrb.mxu3 %v335_v2 }
  0x29   :  { %157 = vmatpush.msrb.mxu1 %v344_v3  ;;  %181 = vmatpush.msrb.mxu2 %v344_v3 }
  0x2a   :  { %134 = vmatpush.msrb.mxu0 %v353_v4  ;;  %205 = vmatpush.msrb.mxu3 %v344_v3 }
  0x2b   :  { %158 = vmatpush.msrb.mxu1 %v353_v4  ;;  %182 = vmatpush.msrb.mxu2 %v353_v4 }
  0x2c   :  { %135 = vmatpush.msrb.mxu0 %v362_v5  ;;  %206 = vmatpush.msrb.mxu3 %v353_v4 }
  0x2d   :  { %159 = vmatpush.msrb.mxu1 %v362_v5  ;;  %183 = vmatpush.msrb.mxu2 %v362_v5 }
  0x2e   :  { %136 = vmatpush.msrb.mxu0 %v371_v6  ;;  %207 = vmatpush.msrb.mxu3 %v362_v5 }
  0x2f   :  { %160 = vmatpush.msrb.mxu1 %v371_v6  ;;  %184 = vmatpush.msrb.mxu2 %v371_v6 }
  0x30   :  { %137 = vmatpush.msrb.mxu0 %v380_v7  ;;  %208 = vmatpush.msrb.mxu3 %v371_v6 }
  0x31   :  { %161 = vmatpush.msrb.mxu1 %v380_v7  ;;  %185 = vmatpush.msrb.mxu2 %v380_v7 }
  0x32   :  { %138 = vmatpush.msrb.mxu0 %v389_v8  ;;  %209 = vmatpush.msrb.mxu3 %v380_v7 }
  0x33   :  { %162 = vmatpush.msrb.mxu1 %v389_v8  ;;  %186 = vmatpush.msrb.mxu2 %v389_v8 }
  0x34   :  { %139 = vmatpush.msrb.mxu0 %v398_v9  ;;  %210 = vmatpush.msrb.mxu3 %v389_v8 }
  0x35   :  { %163 = vmatpush.msrb.mxu1 %v398_v9  ;;  %187 = vmatpush.msrb.mxu2 %v398_v9 }
  0x36   :  { %140 = vmatpush.msrb.mxu0 %v407_v10  ;;  %211 = vmatpush.msrb.mxu3 %v398_v9 }
  0x37   :  { %164 = vmatpush.msrb.mxu1 %v407_v10  ;;  %188 = vmatpush.msrb.mxu2 %v407_v10 }
  0x38   :  { %141 = vmatpush.msrb.mxu0 %v416_v11  ;;  %212 = vmatpush.msrb.mxu3 %v407_v10 }
  0x39   :  { %165 = vmatpush.msrb.mxu1 %v416_v11  ;;  %189 = vmatpush.msrb.mxu2 %v416_v11 }
  0x3a   :  { %142 = vmatpush.msrb.mxu0 %v425_v12  ;;  %213 = vmatpush.msrb.mxu3 %v416_v11 }
  0x3b   :  { %166 = vmatpush.msrb.mxu1 %v425_v12  ;;  %190 = vmatpush.msrb.mxu2 %v425_v12 }
  0x3c   :  { %143 = vmatpush.msrb.mxu0 %v434_v13  ;;  %214 = vmatpush.msrb.mxu3 %v425_v12 }
  0x3d   :  { %167 = vmatpush.msrb.mxu1 %v434_v13  ;;  %191 = vmatpush.msrb.mxu2 %v434_v13 }
  0x3e   :  { %144 = vmatpush.msrb.mxu0 %v443_v14  ;;  %215 = vmatpush.msrb.mxu3 %v434_v13 }
  0x3f   :  { %168 = vmatpush.msrb.mxu1 %v443_v14  ;;  %192 = vmatpush.msrb.mxu2 %v443_v14 }
  0x40   :  { %145 = vmatpush.msrb.mxu0 %v452_v15  ;;  %216 = vmatpush.msrb.mxu3 %v443_v14 }
  0x41   :  { %169 = vmatpush.msrb.mxu1 %v452_v15  ;;  %193 = vmatpush.msrb.mxu2 %v452_v15 }
  0x42   :  { %217 = vmatpush.msrb.mxu3 %v452_v15  ;;  %244 = vmatpush.msra.mxu0 %v239_v41 }
  0x44   :  { %245 = vmatpush.msra.mxu0 %v238_v42 }
  0x46   :  { %246 = vmatpush.msra.mxu0 %v237_v43 }
  0x48   :  { %247 = vmatpush.msra.mxu0 %v236_v44 }
  0x4a   :  { %248 = vmatpush.msra.mxu0 %v235_v45 }
  0x4c   :  { %249 = vmatpush.msra.mxu0 %v234_v46 }
  0x4e   :  { %250 = vmatpush.msra.mxu0 %v233_v47 }
  0x50   :  { %251 = vmatpush.msra.mxu0 %v232_v48 }
  0x52   :  { %252 = vmatpush.msra.mxu0 %v231_v49 }
  0x54   :  { %253 = vmatpush.msra.mxu0 %v230_v50 }
  0x56   :  { %254 = vmatpush.msra.mxu0 %v229_v51 }
  0x58   :  { %255 = vmatpush.msra.mxu0 %v228_v56 }
  0x5a   :  { %256 = vmatpush.msra.mxu0 %v227_v57 }
  0x5c   :  { %257 = vmatpush.msra.mxu0 %v226_v58 }
  0x5e   :  { %258 = vmatpush.msra.mxu0 %v225_v59 }
  0x60   :  { %259 = vmatpush.msra.mxu0 %v224_v60 }
  0x9e   :  { %v51_v18 = vpop.f32.mrf.mxu0 }
  0x9f   :  { %v54_v19 = vadd.f32 %v51_v18, %v17_v17 }
  0xa1   :  { %278 = vtanh.f32 %v54_v19 }
  0xa7   :  { %v279_v20 = vpop.eup %278 }
  0xa8   :  { %74 = vmatmul.f32.vlgmr.msra.gmra.mxu1 %v279_v20 }
 0x125   :  { %v75_v22 = vpop.f32.mrf.mxu1 }
 0x126   :  { %v78_v23 = vadd.f32 %v269_v21, %v75_v22 }
 0x128   :  { %280 = vtanh.f32 %v78_v23 }
 0x12e   :  { %v281_v24 = vpop.eup %280 }
 0x12f   :  { %98 = vmatmul.f32.vlgmr.msra.gmra.mxu2 %v281_v24 }
 0x1b2   :  { %v99_v26 = vpop.f32.mrf.mxu2 }
 0x1b3   :  { %v102_v27 = vadd.f32 %v270_v25, %v99_v26 }
 0x1b5   :  { %282 = vtanh.f32 %v102_v27 }
 0x1bb   :  { %v283_v28 = vpop.eup %282 }
 0x1bc   :  { %122 = vmatmul.f32.vlgmr.msra.gmra.mxu3 %v283_v28 }
 0x23f   :  { %v123_v30 = vpop.f32.mrf.mxu3 }
 0x240   :  { %v126_v31 = vadd.f32 %v271_v29, %v123_v30 }
 0x242   :  { %284 = vtanh.f32 %v126_v31 }
 0x248   :  { %v285_v32 = vpop.eup %284 }
 0x249   :  { %146 = vmatmul.f32.vlgmr.msrb.gmra.mxu0 %v285_v32 }
 0x2c6   :  { %v147_v34 = vpop.f32.mrf.mxu0 }
 0x2c7   :  { %v150_v35 = vadd.f32 %v272_v33, %v147_v34 }
 0x2c9   :  { %286 = vtanh.f32 %v150_v35 }
 0x2cf   :  { %v287_v36 = vpop.eup %286 }
 0x2d0   :  { %170 = vmatmul.f32.vlgmr.msrb.gmra.mxu1 %v287_v36 }
 0x34d   :  { %v171_v38 = vpop.f32.mrf.mxu1 }
 0x34e   :  { %v174_v39 = vadd.f32 %v273_v37, %v171_v38 }
 0x350   :  { %288 = vtanh.f32 %v174_v39 }
 0x356   :  { %v289_v40 = vpop.eup %288 }
 0x357   :  { %194 = vmatmul.f32.vlgmr.msrb.gmra.mxu2 %v289_v40 }
 0x3da   :  { %v195_v53 = vpop.f32.mrf.mxu2 }
 0x3db   :  { %v198_v54 = vadd.f32 %v274_v52, %v195_v53 }
 0x3dd   :  { %290 = vtanh.f32 %v198_v54 }
 0x3e3   :  { %v291_v55 = vpop.eup %290 }
 0x3e4   :  { %218 = vmatmul.f32.vlgmr.msrb.gmra.mxu3 %v291_v55 }
 0x467   :  { %v219_v62 = vpop.f32.mrf.mxu3 }
 0x468   :  { %v222_v63 = vadd.f32 %v275_v61, %v219_v62 }
 0x46a   :  { %292 = vtanh.f32 %v222_v63 }
 0x470   :  { %v293_v0 = vpop.eup %292 }
 0x471   :  { %260 = vmatmul.f32.vlgmr.msra.gmra.mxu0 %v293_v0 }
 0x4ee   :  { %v261_v2 = vpop.f32.mrf.mxu0 }
 0x4ef   :  { %v262_v3 = vadd.f32 %v277_v1, %v261_v2 }
 0x4f1   :  { %264 = vst [vmem:[%s610_s4] sm:$0xff] %v262_v3 }

</bundles_post_ra>
